<compile_context>
chip_gen: v7x
topology: tpu7x:2x2x1
jax: 0.10.0
libtpu: 0.0.40
codegen_flags: <defaults>
</compile_context>

<pallas_src>
import jax
import jax.numpy as jnp
from jax.experimental import pallas as pl
from jax.experimental.pallas import tpu as pltpu


def _influence_kernel(params_ref, x_ref, cost_ref, o_ref):
    # params_ref: (F,) f32 in SMEM; x_ref: (F, TR, TC); cost_ref/o_ref: (TR, TC).
    inv = pl.reciprocal(cost_ref[...], approx=False)       # one exact 1/cost per tile
    n_feat = x_ref.shape[0]
    w = [params_ref[f] for f in range(n_feat)]             # hoisted SMEM scalar reads
    acc = w[0] * jnp.log1p(x_ref[0] * inv)                 # full (TR, TC): dense VPU/EUP
    for f in range(1, n_feat):
        acc = acc + w[f] * jnp.log1p(x_ref[f] * inv)
    o_ref[...] = acc                                       # dense, unmasked store


def influence_model(x, cost, params, *, tc_max=512, tr_max=128):
    """x: (B, F) f32, cost: (B,) f32, params: (F,) f32 -> (B,) f32."""
    B, F = x.shape
    x = x.astype(jnp.float32)
    cost = cost.astype(jnp.float32)
    params = params.astype(jnp.float32)

    lane, sub = 128, 8
    # Lane width: tc_max for large B, shrink (multiple of 128) for small B.
    C = min(tc_max, lane * pl.cdiv(B, lane))
    rows_min = pl.cdiv(B, C)                      # rows needed to hold B elements
    # Number of grid steps: each row-tile at most tr_max rows; prefer >=2 steps
    # (pipeline depth / v7x 2-TC split) once there is enough work for two tiles.
    n = max(1, pl.cdiv(rows_min, tr_max))
    if n == 1 and rows_min >= 2 * sub:
        n = 2
    tr = sub * pl.cdiv(pl.cdiv(rows_min, n), sub)  # rows per tile, multiple of 8
    R = n * tr
    RC = R * C

    # Single fused relayout producer: (B, F) -> (F, R, C), cost -> (R, C).
    # Padded columns use x=0, cost=1 so log1p(0)=0 (no NaN/Inf in padding).
    x_fm = jnp.pad(x.T, ((0, 0), (0, RC - B))).reshape(F, R, C)
    cost_2d = jnp.pad(cost, (0, RC - B), constant_values=1.0).reshape(R, C)

    cost_est = pl.CostEstimate(
        flops=15 * RC,                 # 5 mul (x*inv) + 5 mul (w*log) + adds
        transcendentals=6 * RC,        # 5 log1p + 1 reciprocal per element
        bytes_accessed=(F + 2) * 4 * RC,
    )

    out = pl.pallas_call(
        _influence_kernel,
        out_shape=jax.ShapeDtypeStruct((R, C), jnp.float32),
        grid=(n,),
        in_specs=[
            pl.BlockSpec(memory_space=pltpu.SMEM),           # params (F,) whole, SMEM
            pl.BlockSpec((F, tr, C), lambda i: (0, i, 0)),   # x tile (F, TR, TC)
            pl.BlockSpec((tr, C), lambda i: (i, 0)),         # cost tile (TR, TC)
        ],
        out_specs=pl.BlockSpec((tr, C), lambda i: (i, 0)),   # out tile (TR, TC)
        compiler_params=pltpu.CompilerParams(
            dimension_semantics=("parallel",)),
        cost_estimate=cost_est,
    )(params, x_fm, cost_2d)
    return out.reshape(RC)[:B]


def influence_model_ref(x, cost, params):
    logs = jnp.log1p(x / cost[:, None])
    return jnp.sum(logs * params[None, :], axis=1)


if __name__ == "__main__":
    key = jax.random.PRNGKey(0)
    k_p, k_x, k_c = jax.random.split(key, 3)

    F = 5  # params has 5 entries -> feature dim = 5

    # Deterministic "checkpoint": params ~ N(0,1), matching torch.randn(5).
    params = jax.random.normal(k_p, (F,), dtype=jnp.float32)

    # --- Test 1: small batch (spec-sized), single tile ---
    B = 8
    x = jax.random.uniform(k_x, (B, F), dtype=jnp.float32, minval=0.1, maxval=2.0)
    cost = jax.random.uniform(k_c, (B,), dtype=jnp.float32, minval=0.5, maxval=3.0)

    out = influence_model(x, cost, params)
    jax.block_until_ready(out)
    ref = influence_model_ref(x, cost, params)
    assert out.shape == (B,)
    assert jnp.allclose(out, ref, atol=1e-5, rtol=1e-5), (out, ref)

    # --- Test 2: non-aligned batch exercising multi-step grid + padding ---
    B2 = 2000
    k_x2, k_c2 = jax.random.split(jax.random.PRNGKey(1), 2)
    x2 = jax.random.uniform(k_x2, (B2, F), dtype=jnp.float32, minval=0.1, maxval=2.0)
    cost2 = jax.random.uniform(k_c2, (B2,), dtype=jnp.float32, minval=0.5, maxval=3.0)

    out2 = influence_model(x2, cost2, params, tc_max=128, tr_max=8)  # grid=(2,)
    jax.block_until_ready(out2)
    ref2 = influence_model_ref(x2, cost2, params)
    assert out2.shape == (B2,)
    assert jnp.allclose(out2, ref2, atol=1e-5, rtol=1e-5), (out2, ref2)

    print("KERNEL_OK")
</pallas_src>

<mosaic_0001>
module attributes {stable_mosaic.version = 11 : i64} {
  func.func @_influence_kernel(%arg0: i32, %arg1: memref<5xf32, #tpu.memory_space<smem>>, %arg2: memref<5x8x128xf32, #tpu.memory_space<vmem>>, %arg3: memref<8x128xf32, #tpu.memory_space<vmem>>, %arg4: memref<8x128xf32, #tpu.memory_space<vmem>>) attributes {dimension_semantics = [#tpu.dimension_semantics<parallel>], iteration_bounds = array<i64: 1>, scalar_prefetch = 0 : i64, scratch_operands = 0 : i64, tpu.core_type = #tpu.core_type<tc>, window_params = [{transform_indices = @transform_0, window_bounds = array<i64: 5>}, {transform_indices = @transform_1, window_bounds = array<i64: 5, 8, 128>}, {transform_indices = @transform_2, window_bounds = array<i64: 8, 128>}, {transform_indices = @transform_3, window_bounds = array<i64: 8, 128>}]} {
    %c0 = arith.constant 0 : index
    %c0_0 = arith.constant 0 : index
    %0 = vector.load %arg3[%c0, %c0_0] : memref<8x128xf32, #tpu.memory_space<vmem>>, vector<8x128xf32>
    %1 = tpu.reciprocal %0 : vector<8x128xf32> -> vector<8x128xf32>
    %c0_1 = arith.constant 0 : index
    %2 = memref.load %arg1[%c0_1] : memref<5xf32, #tpu.memory_space<smem>>
    %c1 = arith.constant 1 : index
    %3 = memref.load %arg1[%c1] : memref<5xf32, #tpu.memory_space<smem>>
    %c2 = arith.constant 2 : index
    %4 = memref.load %arg1[%c2] : memref<5xf32, #tpu.memory_space<smem>>
    %c3 = arith.constant 3 : index
    %5 = memref.load %arg1[%c3] : memref<5xf32, #tpu.memory_space<smem>>
    %c4 = arith.constant 4 : index
    %6 = memref.load %arg1[%c4] : memref<5xf32, #tpu.memory_space<smem>>
    %c0_2 = arith.constant 0 : index
    %c0_3 = arith.constant 0 : index
    %c0_4 = arith.constant 0 : index
    %7 = vector.load %arg2[%c0_2, %c0_3, %c0_4] : memref<5x8x128xf32, #tpu.memory_space<vmem>>, vector<1x8x128xf32>
    %8 = vector.shape_cast %7 : vector<1x8x128xf32> to vector<8x128xf32>
    %9 = arith.mulf %8, %1 : vector<8x128xf32>
    %10 = math.log1p %9 : vector<8x128xf32>
    %11 = vector.broadcast %2 : f32 to vector<8x128xf32>
    %12 = arith.mulf %11, %10 : vector<8x128xf32>
    %c1_5 = arith.constant 1 : index
    %c0_6 = arith.constant 0 : index
    %c0_7 = arith.constant 0 : index
    %13 = vector.load %arg2[%c1_5, %c0_6, %c0_7] : memref<5x8x128xf32, #tpu.memory_space<vmem>>, vector<1x8x128xf32>
    %14 = vector.shape_cast %13 : vector<1x8x128xf32> to vector<8x128xf32>
    %15 = arith.mulf %14, %1 : vector<8x128xf32>
    %16 = math.log1p %15 : vector<8x128xf32>
    %17 = vector.broadcast %3 : f32 to vector<8x128xf32>
    %18 = arith.mulf %17, %16 : vector<8x128xf32>
    %19 = arith.addf %12, %18 : vector<8x128xf32>
    %c2_8 = arith.constant 2 : index
    %c0_9 = arith.constant 0 : index
    %c0_10 = arith.constant 0 : index
    %20 = vector.load %arg2[%c2_8, %c0_9, %c0_10] : memref<5x8x128xf32, #tpu.memory_space<vmem>>, vector<1x8x128xf32>
    %21 = vector.shape_cast %20 : vector<1x8x128xf32> to vector<8x128xf32>
    %22 = arith.mulf %21, %1 : vector<8x128xf32>
    %23 = math.log1p %22 : vector<8x128xf32>
    %24 = vector.broadcast %4 : f32 to vector<8x128xf32>
    %25 = arith.mulf %24, %23 : vector<8x128xf32>
    %26 = arith.addf %19, %25 : vector<8x128xf32>
    %c3_11 = arith.constant 3 : index
    %c0_12 = arith.constant 0 : index
    %c0_13 = arith.constant 0 : index
    %27 = vector.load %arg2[%c3_11, %c0_12, %c0_13] : memref<5x8x128xf32, #tpu.memory_space<vmem>>, vector<1x8x128xf32>
    %28 = vector.shape_cast %27 : vector<1x8x128xf32> to vector<8x128xf32>
    %29 = arith.mulf %28, %1 : vector<8x128xf32>
    %30 = math.log1p %29 : vector<8x128xf32>
    %31 = vector.broadcast %5 : f32 to vector<8x128xf32>
    %32 = arith.mulf %31, %30 : vector<8x128xf32>
    %33 = arith.addf %26, %32 : vector<8x128xf32>
    %c4_14 = arith.constant 4 : index
    %c0_15 = arith.constant 0 : index
    %c0_16 = arith.constant 0 : index
    %34 = vector.load %arg2[%c4_14, %c0_15, %c0_16] : memref<5x8x128xf32, #tpu.memory_space<vmem>>, vector<1x8x128xf32>
    %35 = vector.shape_cast %34 : vector<1x8x128xf32> to vector<8x128xf32>
    %36 = arith.mulf %35, %1 : vector<8x128xf32>
    %37 = math.log1p %36 : vector<8x128xf32>
    %38 = vector.broadcast %6 : f32 to vector<8x128xf32>
    %39 = arith.mulf %38, %37 : vector<8x128xf32>
    %40 = arith.addf %33, %39 : vector<8x128xf32>
    %c0_17 = arith.constant 0 : index
    %c0_18 = arith.constant 0 : index
    %41 = vector.load %arg4[%c0_17, %c0_18] : memref<8x128xf32, #tpu.memory_space<vmem>>, vector<8x128xf32>
    tpu.vector_store %arg4[%c0_17, %c0_18], %40 {strides = array<i32>} : memref<8x128xf32, #tpu.memory_space<vmem>>, vector<8x128xf32>,
    return
  }
  func.func @transform_0(%arg0: i32) -> i32 {
    %c0_i32 = arith.constant 0 : i32
    %c0_i32_0 = arith.constant 0 : i32
    return %c0_i32 : i32
  }
  func.func @transform_1(%arg0: i32) -> (i32, i32, i32) {
    %c0_i32 = arith.constant 0 : i32
    %c0_i32_0 = arith.constant 0 : i32
    %c0_i32_1 = arith.constant 0 : i32
    return %c0_i32, %arg0, %c0_i32_0 : i32, i32, i32
  }
  func.func @transform_2(%arg0: i32) -> (i32, i32) {
    %c0_i32 = arith.constant 0 : i32
    %c0_i32_0 = arith.constant 0 : i32
    return %arg0, %c0_i32 : i32, i32
  }
  func.func @transform_3(%arg0: i32) -> (i32, i32) {
    %c0_i32 = arith.constant 0 : i32
    %c0_i32_0 = arith.constant 0 : i32
    return %arg0, %c0_i32 : i32, i32
  }
}

</mosaic_0001>

<bundles_post_ra>
// kernel: tpu_custom_call.1
= control target key start
LH: loop header
LB: loop body
LE: loop exit
PB: predicated region body
PF: predicated region fallthrough
CT: control target
= control target key end

     0   :  { %8 = vsyncpa [#allocation5], 0  ;;  %s363_s0 = inlined_call_operand.hbm [shape: f32[5], index: 0, kind: input, shape index: {}]   ;;  %s364_s1 = inlined_call_operand.hbm [shape: f32[5,8,128], index: 1, kind: input, shape index: {}]   ;;  %s365_s2 = inlined_call_operand.hbm [shape: f32[8,128], index: 2, kind: input, shape index: {}]   ;;  %s366_s3 = inlined_call_operand.hbm [shape: f32[8,128], index: 3, kind: output, shape index: {}]  }
   0x1   :  { %9 = vsyncpa [#allocation3], 0 }
   0x2   :  { %10 = vsyncpa [#allocation8], 0 }
   0x3   :  { %11 = vsyncpa [#allocation4], 0  ;;  %s172_s14 = scalar_lea.hbm %s363_s0, 16 }
   0x4   :  { %p173_p0 = scmp.ne.s32.totalorder %s363_s0, %s172_s14  ;;  %p176_p1 = scmp.lt.u32.totalorder %s172_s14, %s363_s0 }
   0x6   :  { %p178_p2 = pnand %p176_p1, %p173_p0 }
   0x8   :  { %181 = shalt.err (!%p178_p2)
}
   0x9   :  { %s256_s19 = smov [#allocation2]   ;;  %s257_s22 = smov [#allocation6]  }
   0xa   :  { %19 = dma.hbm_to_smem %s363_s0, 16, %s256_s19, [#allocation5]  }
   0xb   :  { %s25_s23 = sshll.u32 %s257_s22, 4  ;;  %s182_s26 = scalar_lea.hbm %s364_s1, 640  ;;  %s26_s23 = int_to_ptr.vmem [resolvable:$true] %s25_s23 }
   0xc   :  { %p183_p3 = scmp.ne.s32.totalorder %s364_s1, %s182_s26  ;;  %p186_p4 = scmp.lt.u32.totalorder %s182_s26, %s364_s1 }
   0xe   :  { %p188_p5 = pnand %p186_p4, %p183_p3 }
  0x10   :  { %191 = shalt.err (!%p188_p5)
}
  0x11   :  { %s192_s4 = scalar_lea.vmem %s26_s23, 640  ;;  %p197_p7 = scmp.lt.s32.totalorder %s26_s23, %s26_s23 }
  0x12   :  { %p193_p6 = scmp.ne.s32.totalorder %s26_s23, %s192_s4  ;;  %p198_p8 = scmp.lt.s32.totalorder %s192_s4, %s192_s4 }
  0x14   :  { %p199_p9 = por %p198_p8, %p197_p7 }
  0x16   :  { %p200_p10 = pnand %p199_p9, %p193_p6 }
  0x18   :  { %203 = shalt.err (!%p200_p10)
}
  0x19   :  { %s258_s0 = smov 128   ;;  %s259_s5 = smov 8  }
  0x1a   :  { %31 = dma.hbm_to_vmem [thread:$0]  %s364_s1, 640, %s26_s23, [#allocation3], %s258_s0, %s258_s0, %s259_s5  }
  0x1b   :  { %s260_s8 = smov [#allocation7]   ;;  %s204_s12 = scalar_lea.hbm %s365_s2, 128 }
  0x1c   :  { %s38_s9 = sshll.u32 %s260_s8, 4  ;;  %p205_p11 = scmp.ne.s32.totalorder %s365_s2, %s204_s12  ;;  %s39_s9 = int_to_ptr.vmem [resolvable:$true] %s38_s9 }
  0x1d   :  { %p208_p12 = scmp.lt.u32.totalorder %s204_s12, %s365_s2 }
  0x1f   :  { %p210_p13 = pnand %p208_p12, %p205_p11 }
  0x21   :  { %213 = shalt.err (!%p210_p13)
}
  0x22   :  { %s214_s17 = scalar_lea.vmem %s39_s9, 128  ;;  %p219_p1 = scmp.lt.s32.totalorder %s39_s9, %s39_s9 }
  0x23   :  { %p215_p0 = scmp.ne.s32.totalorder %s39_s9, %s214_s17  ;;  %p220_p2 = scmp.lt.s32.totalorder %s214_s17, %s214_s17 }
  0x25   :  { %p221_p3 = por %p220_p2, %p219_p1 }
  0x27   :  { %p222_p4 = pnand %p221_p3, %p215_p0 }
  0x29   :  { %225 = shalt.err (!%p222_p4)
}
  0x2a   :  { %41 = dma.hbm_to_vmem [thread:$0]  %s365_s2, 128, %s39_s9, [#allocation8]  }
  0x2b   :  { %248 = dma.done.wait [#allocation5], 16  }
  0x2c   :  { %249 = vsyncadd [#allocation5], 4294967280 }
  0x2d   :  { %250 = dma.done.wait [#allocation3], 640  }
  0x2e   :  { %251 = vsyncadd [#allocation3], 4294966656 }
  0x2f   :  { %252 = dma.done.wait [#allocation8], 128  }
  0x30   :  { %253 = vsyncadd [#allocation8], 4294967168 }
  0x31   :  { %51 = sfence }
  0x32   :  { %v52_v0 = vld [vmem:[#allocation7] sm:$0xff]  ;;  %v59_v1 = vld [vmem:[#allocation6] sm:$0xff]  ;;  %v88_v3 = vld [vmem:[#allocation6 + $0x10] sm:$0xff]  ;;  %s318_s2 = sld [smem:[#allocation2]]  ;;  %s320_s19 = sld [smem:[#allocation2 + $0x1]] }
  0x33   :  { %160 = vrcp.f32 %v52_v0  ;;  %v73_v2 = vld [vmem:[#allocation6 + $0x8] sm:$0xff]  ;;  %v103_v5 = vld [vmem:[#allocation6 + $0x18] sm:$0xff]  ;;  %v118_v9 = vld [vmem:[#allocation6 + $0x20] sm:$0xff]  ;;  %s322_s20 = sld [smem:[#allocation2 + $0x2]]  ;;  %s324_s21 = sld [smem:[#allocation2 + $0x3]] }
  0x34   :  { %s326_s22 = sld [smem:[#allocation2 + $0x4]]  ;;  %s261_s23 = smov [#allocation9]  }
  0x35   :  { %s139_s24 = sshll.u32 %s261_s23, 4  ;;  %s140_s24 = int_to_ptr.vmem [resolvable:$true] %s139_s24 }
  0x36   :  { %s226_s25 = scalar_lea.vmem %s140_s24, 128  ;;  %p231_p6 = scmp.lt.s32.totalorder %s140_s24, %s140_s24 }
  0x37   :  { %p227_p5 = scmp.ne.s32.totalorder %s140_s24, %s226_s25  ;;  %p232_p7 = scmp.lt.s32.totalorder %s226_s25, %s226_s25 }
  0x38   :  { %v70_v32 = vstv %s318_s2  ;;  %v84_v42 = vstv %s320_s19 }
  0x39   :  { %v99_v47 = vstv %s322_s20  ;;  %v114_v52 = vstv %s324_s21  ;;  %p233_p8 = por %p232_p7, %p231_p6 }
  0x3a   :  { %v129_v62 = vstv %s326_s22 }
  0x3b   :  { %p234_p9 = pnand %p233_p8, %p227_p5 }
  0x3d   :  { %v161_v4 = vpop.eup %160 }
  0x3e   :  { %v60_v6 = vmul.f32 %v161_v4, %v59_v1  ;;  %v74_v7 = vmul.f32 %v161_v4, %v73_v2  ;;  %v89_v8 = vmul.f32 %v161_v4, %v88_v3  ;;  %v104_v12 = vmul.f32 %v161_v4, %v103_v5 }
  0x3f   :  { %v119_v14 = vmul.f32 %v161_v4, %v118_v9 }
  0x40   :  { %v61_v10 = vadd.f32 1.0, %v60_v6  ;;  %v75_v11 = vadd.f32 1.0, %v74_v7  ;;  %v90_v13 = vadd.f32 1.0, %v89_v8  ;;  %v64_v15 = vmul.f32 -0.5, %v60_v6 }
  0x41   :  { %v78_v16 = vmul.f32 -0.5, %v74_v7  ;;  %v105_v17 = vadd.f32 1.0, %v104_v12  ;;  %v93_v18 = vmul.f32 -0.5, %v89_v8  ;;  %v120_v19 = vadd.f32 1.0, %v119_v14 }
  0x42   :  { %162 = vlog2.f32 %v61_v10  ;;  %v65_v20 = vadd.f32 1.0, %v64_v15  ;;  %v108_v21 = vmul.f32 -0.5, %v104_v12  ;;  %v67_v22 = vand.u32 2147483647, %v60_v6 }
  0x43   :  { %164 = vlog2.f32 %v75_v11  ;;  %v79_v23 = vadd.f32 1.0, %v78_v16  ;;  %v81_v24 = vand.u32 2147483647, %v74_v7  ;;  %v94_v25 = vadd.f32 1.0, %v93_v18 }
  0x44   :  { %166 = vlog2.f32 %v90_v13  ;;  %v123_v26 = vmul.f32 -0.5, %v119_v14  ;;  %v96_v27 = vand.u32 2147483647, %v89_v8  ;;  %v66_v28 = vmul.f32 %v65_v20, %v60_v6 }
  0x45   :  { %168 = vlog2.f32 %v105_v17  ;;  %v109_v29 = vadd.f32 1.0, %v108_v21  ;;  %vm328_vm0 = vcmp.lt.f32.partialorder %v67_v22, 0.0004427343  ;;  %v80_v33 = vmul.f32 %v79_v23, %v74_v7 }
  0x46   :  { %170 = vlog2.f32 %v120_v19  ;;  %v111_v34 = vand.u32 2147483647, %v104_v12  ;;  %vm333_vm1 = vcmp.lt.f32.partialorder %v81_v24, 0.0004427343  ;;  %v95_v38 = vmul.f32 %v94_v25, %v89_v8 }
  0x47   :  { %v124_v39 = vadd.f32 1.0, %v123_v26  ;;  %vm338_vm2 = vcmp.lt.f32.partialorder %v96_v27, 0.0004427343  ;;  %v126_v44 = vand.u32 2147483647, %v119_v14  ;;  %v110_v48 = vmul.f32 %v109_v29, %v104_v12 }
  0x48   :  { %vm112_vm3 = vcmp.lt.f32.partialorder %v111_v34, 0.0004427343 }
  0x49   :  { %v125_v56 = vmul.f32 %v124_v39, %v119_v14  ;;  %vm127_vm4 = vcmp.lt.f32.partialorder %v126_v44, 0.0004427343 }
  0x4c   :  { %v163_v30 = vpop.eup %162 }
  0x4d   :  { %v165_v35 = vpop.eup %164  ;;  %v63_v36 = vmul.f32 0.6931472, %v163_v30 }
  0x4e   :  { %v167_v40 = vpop.eup %166  ;;  %v77_v41 = vmul.f32 0.6931472, %v165_v35 }
  0x4f   :  { %v69_v45 = vsel %vm328_vm0, %v66_v28, %v63_v36  ;;  %v92_v46 = vmul.f32 0.6931472, %v167_v40  ;;  %v169_v49 = vpop.eup %168 }
  0x50   :  { %v71_v50 = vmul.f32 %v70_v32, %v69_v45  ;;  %v83_v51 = vsel %vm333_vm1, %v80_v33, %v77_v41  ;;  %v107_v55 = vmul.f32 0.6931472, %v169_v49  ;;  %v171_v57 = vpop.eup %170 }
  0x51   :  { %v85_v53 = vmul.f32 %v84_v42, %v83_v51  ;;  %v98_v54 = vsel %vm338_vm2, %v95_v38, %v92_v46  ;;  %v122_v61 = vmul.f32 0.6931472, %v171_v57 }
  0x52   :  { %v100_v58 = vmul.f32 %v99_v47, %v98_v54  ;;  %v113_v60 = vsel %vm112_vm3, %v110_v48, %v107_v55 }
  0x53   :  { %v86_v59 = vadd.f32 %v85_v53, %v71_v50  ;;  %v115_v63 = vmul.f32 %v114_v52, %v113_v60  ;;  %v128_v1 = vsel %vm127_vm4, %v125_v56, %v122_v61 }
  0x54   :  { %v130_v2 = vmul.f32 %v129_v62, %v128_v1 }
  0x55   :  { %v101_v0 = vadd.f32 %v100_v58, %v86_v59 }
  0x57   :  { %v116_v3 = vadd.f32 %v115_v63, %v101_v0 }
  0x59   :  { %v131_v4 = vadd.f32 %v130_v2, %v116_v3 }
  0x5b   :  { %132 = vst [vmem:[#allocation9] sm:$0xff] %v131_v4 }
  0x5c   :  { %237 = shalt.err (!%p234_p9)
}
  0x5d   :  { %s238_s28 = scalar_lea.hbm %s366_s3, 128 }
  0x5e   :  { %p239_p10 = scmp.ne.s32.totalorder %s366_s3, %s238_s28  ;;  %p242_p11 = scmp.lt.u32.totalorder %s238_s28, %s366_s3 }
  0x60   :  { %p244_p12 = pnand %p242_p11, %p239_p10 }
  0x62   :  { %247 = shalt.err (!%p244_p12)
}
  0x63   :  { %142 = dma.vmem_to_hbm [thread:$0]  %s140_s24, 128, %s366_s3, [#allocation4]  }
  0x64   :  { %254 = dma.done.wait [#allocation4], 128  }
  0x65   :  { %255 = vsyncadd [#allocation4], 4294967168 }
  0x66   :  { %146 = vsyncpa [#allocation3], 1 }
  0x67   :  { %147 = vsyncpa [#allocation8], 1 }
  0x68   :  { %148 = vsyncpa [#allocation4], 1 }
  0x69   :  { %149 = vsyncpa [#allocation5], 1 }

</bundles_post_ra>
